<compile_context>
chip_gen: v7x
topology: tpu7x:2x2x1
jax: 0.10.0
libtpu: 0.0.40
codegen_flags: <defaults>
</compile_context>

<pallas_src>
import functools

import jax
import jax.numpy as jnp
from jax.experimental import pallas as pl
from jax.experimental.pallas import tpu as pltpu


# ----------------------------------------------------------------------------
# Fused kernel: student forward (logits = x_flat @ W + b) + pseudo-label loss
#
#   y_probs  = softmax(y, axis=1)
#   onehot   = one_hot(argmax_c y_probs)           (== argmax_c y)
#   gt_mask  = max_c (y_probs > th)                (== max_c y_probs > th)
#   p_target = gt_mask * n_classes * onehot  (+ lt_mask * y_probs if soft)
#   loss     = mean_n ( -(p_target * log_softmax(logits)).sum(1) * mask )
# ----------------------------------------------------------------------------
def _pl_fused_kernel(x_ref, w_ref, b_ref, y_ref, mask_ref, o_ref, *,
                     n_classes, threshold, soft):
    n = x_ref.shape[0]

    # --- student model forward: logits never leave the kernel --------------
    logits = (
        jnp.dot(x_ref[...], w_ref[...], preferred_element_type=jnp.float32)
        + b_ref[...]
    )                                                           # [N, C] f32

    y = y_ref[...].astype(jnp.float32)                          # [N, C]
    mask = mask_ref[...].astype(jnp.float32)                    # [N, 1]

    # --- teacher softmax pieces (no full normalize needed in hard mode) ----
    y_max = jnp.max(y, axis=1, keepdims=True)                   # [N, 1]
    y_exp = jnp.exp(y - y_max)                                  # [N, C]
    denom = jnp.sum(y_exp, axis=1, keepdims=True)               # [N, 1]
    p_max = 1.0 / denom           # == max_c softmax(y), exactly (exp(0)=1)

    # first-occurrence argmax one-hot, computed directly from raw y
    # (softmax is strictly monotone, so argmax/ties are identical)
    class_ids = jax.lax.broadcasted_iota(jnp.int32, y.shape, 1)
    is_max = y >= y_max
    first_idx = jnp.min(
        jnp.where(is_max, class_ids, jnp.int32(n_classes)), axis=1,
        keepdims=True)
    onehot = (class_ids == first_idx).astype(jnp.float32)       # [N, C]

    # gt_mask = [any class prob > th] = [max prob > th]
    gt_mask = (p_max > threshold).astype(jnp.float32)           # [N, 1]

    p_target = gt_mask * jnp.float32(n_classes) * onehot
    if soft:
        y_probs = y_exp / denom   # exact divide: keeps target values faithful
        p_target = p_target + (1.0 - gt_mask) * y_probs

    # --- log_softmax of student logits over the class axis -----------------
    l_max = jnp.max(logits, axis=1, keepdims=True)
    shifted = logits - l_max
    log_sm = shifted - jnp.log(jnp.sum(jnp.exp(shifted), axis=1, keepdims=True))

    # --- masked per-sample loss, mean over the full batch -------------------
    per_sample = -jnp.sum(p_target * log_sm, axis=1, keepdims=True) * mask
    o_ref[0, 0] = jnp.sum(per_sample) / jnp.float32(n)


def pl_forward(x_flat, w, b, y, mask, *, n_classes, threshold, soft):
    n, d = x_flat.shape
    c = w.shape[1]
    kernel = functools.partial(
        _pl_fused_kernel, n_classes=n_classes, threshold=threshold, soft=soft
    )
    out = pl.pallas_call(
        kernel,
        out_shape=jax.ShapeDtypeStruct((1, 1), jnp.float32),
        in_specs=[
            pl.BlockSpec((n, d), lambda: (0, 0)),   # x_flat
            pl.BlockSpec((d, c), lambda: (0, 0)),   # w
            pl.BlockSpec((1, c), lambda: (0, 0)),   # b
            pl.BlockSpec((n, c), lambda: (0, 0)),   # teacher logits y
            pl.BlockSpec((n, 1), lambda: (0, 0)),   # per-sample mask
        ],
        # Scalar result -> SMEM output (no masked 1-lane vector store).
        out_specs=pl.BlockSpec(memory_space=pltpu.MemorySpace.SMEM),
        cost_estimate=pl.CostEstimate(
            flops=2 * n * d * c,
            transcendentals=2 * n * c,
            bytes_accessed=4 * (n * d + d * c + c + 2 * n * c + n) + 4,
        ),
    )(x_flat, w, b, y, mask.reshape(n, 1))
    return out[0, 0]


# ----------------------------------------------------------------------------
# PL module (JAX wrapper)
# ----------------------------------------------------------------------------
class PL:
    def __init__(self, n_classes, threshold, soft=False):
        self.n_classes = n_classes
        self.th = threshold
        self.soft = soft

    def __call__(self, x, y, model_params, mask):
        # model.module.update_batch_stats(False)  -> no-op (see TODO above)
        w, b = model_params
        x_flat = x.reshape(x.shape[0], -1)
        # Fused: model(x) + pseudo-label loss in one kernel; logits stay
        # on-chip.  (tuple-output handling not needed: synthetic model
        # returns a single array.)
        loss = pl_forward(
            x_flat, w, b, y, mask,
            n_classes=self.n_classes, threshold=self.th, soft=self.soft,
        )
        # model.module.update_batch_stats(True)   -> no-op
        return loss


# ----------------------------------------------------------------------------
# Pure-JAX reference for verification
# ----------------------------------------------------------------------------
def _reference(x, y, w, b, mask, n_classes, threshold, soft):
    logits = x.reshape(x.shape[0], -1) @ w + b
    y_probs = jax.nn.softmax(y, axis=1)
    onehot = jax.nn.one_hot(jnp.argmax(y_probs, axis=1), n_classes,
                            dtype=jnp.float32)
    gt_mask = jnp.max((y_probs > threshold).astype(jnp.float32), axis=1)
    lt_mask = 1.0 - gt_mask
    p_target = gt_mask[:, None] * n_classes * onehot
    if soft:
        p_target = p_target + lt_mask[:, None] * y_probs
    log_sm = jax.nn.log_softmax(logits, axis=1)
    return jnp.mean(-(p_target * log_sm).sum(axis=1) * mask)


if __name__ == "__main__":
    N, C_IN, H, W = 8, 4, 16, 16
    N_CLASSES = 16
    THRESHOLD = 0.2
    SOFT = False

    key = jax.random.PRNGKey(0)
    kx, ky, kw, kb, km = jax.random.split(key, 5)

    x = jax.random.normal(kx, (N, C_IN, H, W), dtype=jnp.float32)      # NCHW
    y = jax.random.normal(ky, (N, N_CLASSES), dtype=jnp.float32)       # teacher logits
    w = (jax.random.normal(kw, (C_IN * H * W, N_CLASSES), dtype=jnp.float32)
         * 0.02)                                                       # model weight
    b = jnp.zeros((1, N_CLASSES), dtype=jnp.float32)                   # model bias
    mask = (jax.random.uniform(km, (N,)) > 0.3).astype(jnp.float32)    # sample mask

    pl_module = PL(N_CLASSES, THRESHOLD, soft=SOFT)
    loss = pl_module(x, y, (w, b), mask)
    loss = jax.block_until_ready(loss)

    ref = _reference(x, y, w, b, mask, N_CLASSES, THRESHOLD, SOFT)
    assert jnp.allclose(loss, ref, rtol=1e-4, atol=1e-4), (loss, ref)

    # also exercise the soft path once
    pl_soft = PL(N_CLASSES, THRESHOLD, soft=True)
    loss_s = jax.block_until_ready(pl_soft(x, y, (w, b), mask))
    ref_s = _reference(x, y, w, b, mask, N_CLASSES, THRESHOLD, True)
    assert jnp.allclose(loss_s, ref_s, rtol=1e-4, atol=1e-4), (loss_s, ref_s)

    print("KERNEL_OK")
</pallas_src>

<mosaic_0001>
module attributes {stable_mosaic.version = 11 : i64} {
  func.func @_pl_fused_kernel(%arg0: memref<8x1024xf32, #tpu.memory_space<vmem>>, %arg1: memref<1024x16xf32, #tpu.memory_space<vmem>>, %arg2: memref<1x16xf32, #tpu.memory_space<vmem>>, %arg3: memref<8x16xf32, #tpu.memory_space<vmem>>, %arg4: memref<8x1xf32, #tpu.memory_space<vmem>>, %arg5: memref<1x1xf32, #tpu.memory_space<smem>>) attributes {dimension_semantics = [], scalar_prefetch = 0 : i64, scratch_operands = 0 : i64, tpu.core_type = #tpu.core_type<tc>} {
    %c0 = arith.constant 0 : index
    %c0_0 = arith.constant 0 : index
    %0 = vector.load %arg0[%c0, %c0_0] : memref<8x1024xf32, #tpu.memory_space<vmem>>, vector<8x1024xf32>
    %c0_1 = arith.constant 0 : index
    %c0_2 = arith.constant 0 : index
    %1 = vector.load %arg1[%c0_1, %c0_2] : memref<1024x16xf32, #tpu.memory_space<vmem>>, vector<1024x16xf32>
    %cst = arith.constant dense<0.000000e+00> : vector<8x16xf32>
    %2 = tpu.matmul %0, %1, %cst {dimension_numbers = #tpu.dot_dimension_numbers<[1], [0], [0], [1], [0, 0, 1, 1], [], []>} : vector<8x1024xf32>, vector<1024x16xf32>, vector<8x16xf32> -> vector<8x16xf32>
    %c0_3 = arith.constant 0 : index
    %c0_4 = arith.constant 0 : index
    %3 = vector.load %arg2[%c0_3, %c0_4] : memref<1x16xf32, #tpu.memory_space<vmem>>, vector<1x16xf32>
    %4 = vector.broadcast %3 : vector<1x16xf32> to vector<8x16xf32>
    %5 = arith.addf %2, %4 : vector<8x16xf32>
    %c0_5 = arith.constant 0 : index
    %c0_6 = arith.constant 0 : index
    %6 = vector.load %arg3[%c0_5, %c0_6] : memref<8x16xf32, #tpu.memory_space<vmem>>, vector<8x16xf32>
    %c0_7 = arith.constant 0 : index
    %c0_8 = arith.constant 0 : index
    %7 = vector.load %arg4[%c0_7, %c0_8] : memref<8x1xf32, #tpu.memory_space<vmem>>, vector<8x1xf32>
    %cst_9 = arith.constant dense<0xFF800000> : vector<8xf32>
    %8 = vector.multi_reduction <maximumf>, %6, %cst_9 [1] : vector<8x16xf32> to vector<8xf32>
    %9 = vector.shape_cast %8 : vector<8xf32> to vector<8x1xf32>
    %10 = vector.broadcast %9 : vector<8x1xf32> to vector<8x16xf32>
    %11 = arith.subf %6, %10 : vector<8x16xf32>
    %12 = math.exp %11 : vector<8x16xf32>
    %cst_10 = arith.constant dense<0.000000e+00> : vector<8xf32>
    %13 = vector.multi_reduction <add>, %12, %cst_10 [1] : vector<8x16xf32> to vector<8xf32>
    %14 = vector.shape_cast %13 : vector<8xf32> to vector<8x1xf32>
    %cst_11 = arith.constant 1.000000e+00 : f32
    %15 = vector.broadcast %cst_11 : f32 to vector<8x1xf32>
    %16 = arith.divf %15, %14 : vector<8x1xf32>
    %17 = tpu.iota {dimensions = array<i32: 1>} : vector<8x16xi32>
    %18 = vector.broadcast %9 : vector<8x1xf32> to vector<8x16xf32>
    %19 = arith.cmpf oge, %6, %18 : vector<8x16xf32>
    %c16_i32 = arith.constant 16 : i32
    %20 = vector.broadcast %c16_i32 : i32 to vector<8x16xi32>
    %21 = arith.select %19, %17, %20 : vector<8x16xi1>, vector<8x16xi32>
    %cst_12 = arith.constant dense<2147483647> : vector<8xi32>
    %22 = vector.multi_reduction <minsi>, %21, %cst_12 [1] : vector<8x16xi32> to vector<8xi32>
    %23 = vector.shape_cast %22 : vector<8xi32> to vector<8x1xi32>
    %24 = vector.broadcast %23 : vector<8x1xi32> to vector<8x16xi32>
    %25 = arith.cmpi eq, %17, %24 : vector<8x16xi32>
    %26 = arith.extui %25 : vector<8x16xi1> to vector<8x16xi32>
    %27 = arith.sitofp %26 : vector<8x16xi32> to vector<8x16xf32>
    %cst_13 = arith.constant 2.000000e-01 : f32
    %28 = vector.broadcast %cst_13 : f32 to vector<8x1xf32>
    %29 = arith.cmpf ogt, %16, %28 : vector<8x1xf32>
    %30 = arith.extui %29 : vector<8x1xi1> to vector<8x1xi32>
    %31 = arith.sitofp %30 : vector<8x1xi32> to vector<8x1xf32>
    %cst_14 = arith.constant 1.600000e+01 : f32
    %32 = vector.broadcast %cst_14 : f32 to vector<8x1xf32>
    %33 = arith.mulf %31, %32 : vector<8x1xf32>
    %34 = vector.broadcast %33 : vector<8x1xf32> to vector<8x16xf32>
    %35 = arith.mulf %34, %27 : vector<8x16xf32>
    %cst_15 = arith.constant dense<0xFF800000> : vector<8xf32>
    %36 = vector.multi_reduction <maximumf>, %5, %cst_15 [1] : vector<8x16xf32> to vector<8xf32>
    %37 = vector.shape_cast %36 : vector<8xf32> to vector<8x1xf32>
    %38 = vector.broadcast %37 : vector<8x1xf32> to vector<8x16xf32>
    %39 = arith.subf %5, %38 : vector<8x16xf32>
    %40 = math.exp %39 : vector<8x16xf32>
    %cst_16 = arith.constant dense<0.000000e+00> : vector<8xf32>
    %41 = vector.multi_reduction <add>, %40, %cst_16 [1] : vector<8x16xf32> to vector<8xf32>
    %42 = vector.shape_cast %41 : vector<8xf32> to vector<8x1xf32>
    %43 = math.log %42 : vector<8x1xf32>
    %44 = vector.broadcast %43 : vector<8x1xf32> to vector<8x16xf32>
    %45 = arith.subf %39, %44 : vector<8x16xf32>
    %46 = arith.mulf %35, %45 : vector<8x16xf32>
    %cst_17 = arith.constant dense<0.000000e+00> : vector<8xf32>
    %47 = vector.multi_reduction <add>, %46, %cst_17 [1] : vector<8x16xf32> to vector<8xf32>
    %48 = vector.shape_cast %47 : vector<8xf32> to vector<8x1xf32>
    %cst_18 = arith.constant 0.000000e+00 : f32
    %49 = vector.broadcast %cst_18 : f32 to vector<8x1xf32>
    %50 = arith.subf %49, %48 : vector<8x1xf32>
    %51 = arith.mulf %50, %7 : vector<8x1xf32>
    %52 = vector.shape_cast %51 : vector<8x1xf32> to vector<1x8x1xf32>
    %cst_19 = arith.constant dense<0.000000e+00> : vector<1xf32>
    %53 = vector.multi_reduction <add>, %52, %cst_19 [1, 2] : vector<1x8x1xf32> to vector<1xf32>
    %54 = vector.shape_cast %53 : vector<1xf32> to vector<1x1x1xf32>
    %55 = vector.extract %54[0, 0, 0] : f32 from vector<1x1x1xf32>
    %cst_20 = arith.constant 8.000000e+00 : f32
    %56 = arith.divf %55, %cst_20 : f32
    %c0_21 = arith.constant 0 : index
    %c0_22 = arith.constant 0 : index
    %57 = memref.load %arg5[%c0_21, %c0_22] : memref<1x1xf32, #tpu.memory_space<smem>>
    memref.store %56, %arg5[%c0_21, %c0_22] : memref<1x1xf32, #tpu.memory_space<smem>>
    return
  }
}

</mosaic_0001>

<bundles_post_ra>
// kernel: tpu_custom_call.1
= control target key start
LH: loop header
LB: loop body
LE: loop exit
PB: predicated region body
PF: predicated region fallthrough
CT: control target
= control target key end

     0   :  { %vm446_vm0 = vcmask 130048   ;;  %s1303_s0 = inlined_call_operand.vmem [shape: f32[8,1024], index: 0, kind: input, shape index: {}]   ;;  %s1304_s1 = inlined_call_operand.vmem [shape: f32[1024,16], index: 1, kind: input, shape index: {}]   ;;  %s1305_s2 = inlined_call_operand.vmem [shape: f32[1,16], index: 2, kind: input, shape index: {}]   ;;  %s1306_s3 = inlined_call_operand.vmem [shape: f32[8,16], index: 3, kind: input, shape index: {}]   ;;  %s1307_s4 = inlined_call_operand.vmem [shape: f32[8,1], index: 4, kind: input, shape index: {}]   ;;  %s1308_s5 = inlined_call_operand.hbm [shape: f32[1,1], index: 5, kind: output, shape index: {}]  }
   0x1   :  { %v45_v0 = vld [vmem:[%s1304_s1 + $0x80] sm:$0xff]  ;;  %v46_v1 = vld [vmem:[%s1304_s1 + $0x88] sm:$0xff]  ;;  %v47_v11 = vld [vmem:[%s1304_s1 + $0x90] sm:$0xff] }
   0x2   :  { %v29_v2 = vld [vmem:[%s1304_s1] sm:$0xff]  ;;  %v675_v3 = vpack.c.bf16 %v46_v1, %v45_v0  ;;  %v30_v4 = vld [vmem:[%s1304_s1 + $0x8] sm:$0xff]  ;;  %v48_v13 = vld [vmem:[%s1304_s1 + $0x98] sm:$0xff] }
   0x3   :  { %v77_v5 = vld [vmem:[%s1304_s1 + $0x180] sm:$0xff]  ;;  %v78_v6 = vld [vmem:[%s1304_s1 + $0x188] sm:$0xff]  ;;  %v677_v7 = vpack.c.bf16 %v30_v4, %v29_v2  ;;  %v31_v14 = vld [vmem:[%s1304_s1 + $0x10] sm:$0xff]  ;;  %v679_v16 = vpack.c.bf16 %v48_v13, %v47_v11 }
   0x4   :  { %v707_v8 = vpack.c.bf16 %v78_v6, %v77_v5  ;;  %v61_v9 = vld [vmem:[%s1304_s1 + $0x100] sm:$0xff]  ;;  %v62_v10 = vld [vmem:[%s1304_s1 + $0x108] sm:$0xff]  ;;  %676 = vmatprep.subr.bf16.mxu0 %v675_v3  ;;  %v32_v15 = vld [vmem:[%s1304_s1 + $0x18] sm:$0xff] }
   0x5   :  { %v709_v12 = vpack.c.bf16 %v62_v10, %v61_v9  ;;  %678 = vmatpush3.bf16.msra.mxu0 %v677_v7  ;;  %v681_v17 = vpack.c.bf16 %v32_v15, %v31_v14  ;;  %v79_v18 = vld [vmem:[%s1304_s1 + $0x190] sm:$0xff]  ;;  %v80_v19 = vld [vmem:[%s1304_s1 + $0x198] sm:$0xff]  ;;  %v49_v23 = vld [vmem:[%s1304_s1 + $0xa0] sm:$0xff] }
   0x6   :  { %708 = vmatprep.subr.bf16.mxu1 %v707_v8  ;;  %v63_v20 = vld [vmem:[%s1304_s1 + $0x110] sm:$0xff]  ;;  %v711_v21 = vpack.c.bf16 %v80_v19, %v79_v18  ;;  %v64_v22 = vld [vmem:[%s1304_s1 + $0x118] sm:$0xff]  ;;  %v50_v24 = vld [vmem:[%s1304_s1 + $0xa8] sm:$0xff]  ;;  %680 = vmatprep.subr.bf16.mxu0 %v679_v16 }
   0x7   :  { %710 = vmatpush3.bf16.msra.mxu1 %v709_v12  ;;  %v713_v25 = vpack.c.bf16 %v64_v22, %v63_v20  ;;  %v683_v26 = vpack.c.bf16 %v50_v24, %v49_v23  ;;  %v33_v27 = vld [vmem:[%s1304_s1 + $0x20] sm:$0xff]  ;;  %v34_v28 = vld [vmem:[%s1304_s1 + $0x28] sm:$0xff]  ;;  %v51_v35 = vld [vmem:[%s1304_s1 + $0xb0] sm:$0xff] }
   0x8   :  { %v81_v29 = vld [vmem:[%s1304_s1 + $0x1a0] sm:$0xff]  ;;  %712 = vmatprep.subr.bf16.mxu1 %v711_v21  ;;  %v82_v30 = vld [vmem:[%s1304_s1 + $0x1a8] sm:$0xff]  ;;  %v685_v33 = vpack.c.bf16 %v34_v28, %v33_v27  ;;  %v52_v36 = vld [vmem:[%s1304_s1 + $0xb8] sm:$0xff] }
   0x9   :  { %v65_v31 = vld [vmem:[%s1304_s1 + $0x120] sm:$0xff]  ;;  %v66_v32 = vld [vmem:[%s1304_s1 + $0x128] sm:$0xff]  ;;  %682 = vmatpush3.bf16.msra.mxu0 %v681_v17  ;;  %v715_v34 = vpack.c.bf16 %v82_v30, %v81_v29  ;;  %v687_v39 = vpack.c.bf16 %v52_v36, %v51_v35  ;;  %v35_v41 = vld [vmem:[%s1304_s1 + $0x30] sm:$0xff] }
   0xa   :  { %v940_v37 = vld [vmem:[%s1306_s3] sm:$0xff]  ;;  %684 = vmatprep.subr.bf16.mxu0 %v683_v26  ;;  %v717_v38 = vpack.c.bf16 %v66_v32, %v65_v31  ;;  %v36_v42 = vld [vmem:[%s1304_s1 + $0x38] sm:$0xff]  ;;  %v83_v43 = vld [vmem:[%s1304_s1 + $0x1b0] sm:$0xff] }
   0xb   :  { %714 = vmatpush3.bf16.msra.mxu1 %v713_v25  ;;  %v447_v40 = vsel %vm446_vm0, %v940_v37, -inf  ;;  %v84_v44 = vld [vmem:[%s1304_s1 + $0x1b8] sm:$0xff]  ;;  %v67_v45 = vld [vmem:[%s1304_s1 + $0x130] sm:$0xff]  ;;  %v53_v48 = vld [vmem:[%s1304_s1 + $0xc0] sm:$0xff]  ;;  %v689_v50 = vpack.c.bf16 %v36_v42, %v35_v41 }
   0xc   :  { %716 = vmatprep.subr.bf16.mxu1 %v715_v34  ;;  %448 = vmax.xlane.f32.xlu0 %v447_v40  ;;  %v68_v46 = vld [vmem:[%s1304_s1 + $0x138] sm:$0xff]  ;;  %v719_v47 = vpack.c.bf16 %v84_v44, %v83_v43  ;;  %v54_v49 = vld [vmem:[%s1304_s1 + $0xc8] sm:$0xff]  ;;  %v85_v51 = vld [vmem:[%s1304_s1 + $0x1c0] sm:$0xff] }
   0xd   :  { %686 = vmatpush3.bf16.msra.mxu0 %v685_v33  ;;  %v86_v52 = vld [vmem:[%s1304_s1 + $0x1c8] sm:$0xff]  ;;  %v721_v53 = vpack.c.bf16 %v68_v46, %v67_v45  ;;  %v691_v54 = vpack.c.bf16 %v54_v49, %v53_v48  ;;  %v37_v55 = vld [vmem:[%s1304_s1 + $0x40] sm:$0xff]  ;;  %v55_v60 = vld [vmem:[%s1304_s1 + $0xd0] sm:$0xff] }
   0xe   :  { %688 = vmatprep.subr.bf16.mxu0 %v687_v39  ;;  %v38_v56 = vld [vmem:[%s1304_s1 + $0x48] sm:$0xff]  ;;  %v69_v57 = vld [vmem:[%s1304_s1 + $0x140] sm:$0xff]  ;;  %v723_v58 = vpack.c.bf16 %v86_v52, %v85_v51  ;;  %v56_v61 = vld [vmem:[%s1304_s1 + $0xd8] sm:$0xff] }
   0xf   :  { %718 = vmatpush3.bf16.msra.mxu1 %v717_v38  ;;  %v70_v59 = vld [vmem:[%s1304_s1 + $0x148] sm:$0xff]  ;;  %v87_v62 = vld [vmem:[%s1304_s1 + $0x1d0] sm:$0xff]  ;;  %v88_v63 = vld [vmem:[%s1304_s1 + $0x1d8] sm:$0xff]  ;;  %v693_v0 = vpack.c.bf16 %v38_v56, %v37_v55  ;;  %v695_v2 = vpack.c.bf16 %v56_v61, %v55_v60 }
  0x10   :  { %720 = vmatprep.subr.bf16.mxu1 %v719_v47  ;;  %v725_v1 = vpack.c.bf16 %v70_v59, %v69_v57  ;;  %v39_v3 = vld [vmem:[%s1304_s1 + $0x50] sm:$0xff]  ;;  %v40_v4 = vld [vmem:[%s1304_s1 + $0x58] sm:$0xff]  ;;  %v727_v6 = vpack.c.bf16 %v88_v63, %v87_v62  ;;  %v57_v8 = vld [vmem:[%s1304_s1 + $0xe0] sm:$0xff] }
  0x11   :  { %690 = vmatpush3.bf16.msra.mxu0 %v689_v50  ;;  %v71_v5 = vld [vmem:[%s1304_s1 + $0x150] sm:$0xff]  ;;  %v72_v7 = vld [vmem:[%s1304_s1 + $0x158] sm:$0xff]  ;;  %v58_v9 = vld [vmem:[%s1304_s1 + $0xe8] sm:$0xff]  ;;  %v697_v12 = vpack.c.bf16 %v40_v4, %v39_v3 }
  0x12   :  { %692 = vmatprep.subr.bf16.mxu0 %v691_v54  ;;  %v89_v10 = vld [vmem:[%s1304_s1 + $0x1e0] sm:$0xff]  ;;  %v90_v11 = vld [vmem:[%s1304_s1 + $0x1e8] sm:$0xff]  ;;  %v729_v14 = vpack.c.bf16 %v72_v7, %v71_v5  ;;  %v699_v15 = vpack.c.bf16 %v58_v9, %v57_v8  ;;  %v59_v21 = vld [vmem:[%s1304_s1 + $0xf0] sm:$0xff] }
  0x13   :  { %722 = vmatpush3.bf16.msra.mxu1 %v721_v53  ;;  %v41_v13 = vld [vmem:[%s1304_s1 + $0x60] sm:$0xff]  ;;  %v42_v16 = vld [vmem:[%s1304_s1 + $0x68] sm:$0xff]  ;;  %v731_v19 = vpack.c.bf16 %v90_v11, %v89_v10  ;;  %v60_v22 = vld [vmem:[%s1304_s1 + $0xf8] sm:$0xff] }
  0x14   :  { %724 = vmatprep.subr.bf16.mxu1 %v723_v58  ;;  %v73_v17 = vld [vmem:[%s1304_s1 + $0x160] sm:$0xff]  ;;  %v22_v18 = vld [vmem:[%s1303_s0 + $0x8] sm:$0xff]  ;;  %v91_v23 = vld [vmem:[%s1304_s1 + $0x1f0] sm:$0xff]  ;;  %v701_v26 = vpack.c.bf16 %v42_v16, %v41_v13  ;;  %v703_v28 = vpack.c.bf16 %v60_v22, %v59_v21 }
  0x15   :  { %694 = vmatpush3.bf16.msra.mxu0 %v693_v0  ;;  %v74_v20 = vld [vmem:[%s1304_s1 + $0x168] sm:$0xff]  ;;  %228 = vmatprep.mubr.f32.mxu0 %v22_v18  ;;  %v92_v24 = vld [vmem:[%s1304_s1 + $0x1f8] sm:$0xff]  ;;  %v43_v29 = vld [vmem:[%s1304_s1 + $0x70] sm:$0xff] }
  0x16   :  { %696 = vmatprep.subr.bf16.mxu0 %v695_v2  ;;  %v24_v25 = vld [vmem:[%s1303_s0 + $0x18] sm:$0xff]  ;;  %v733_v27 = vpack.c.bf16 %v74_v20, %v73_v17  ;;  %v75_v31 = vld [vmem:[%s1304_s1 + $0x170] sm:$0xff]  ;;  %v735_v32 = vpack.c.bf16 %v92_v24, %v91_v23  ;;  %v109_v34 = vld [vmem:[%s1304_s1 + $0x280] sm:$0xff] }
  0x17   :  { %726 = vmatpush3.bf16.msra.mxu1 %v725_v1  ;;  %298 = vmatprep.mubr.f32.mxu1 %v24_v25  ;;  %v44_v30 = vld [vmem:[%s1304_s1 + $0x78] sm:$0xff]  ;;  %v110_v35 = vld [vmem:[%s1304_s1 + $0x288] sm:$0xff]  ;;  %v141_v36 = vld [vmem:[%s1304_s1 + $0x380] sm:$0xff] }
  0x18   :  { %728 = vmatprep.subr.bf16.mxu1 %v727_v6  ;;  %v76_v33 = vld [vmem:[%s1304_s1 + $0x178] sm:$0xff]  ;;  %v142_v38 = vld [vmem:[%s1304_s1 + $0x388] sm:$0xff]  ;;  %v705_v39 = vpack.c.bf16 %v44_v30, %v43_v29  ;;  %v739_v41 = vpack.c.bf16 %v110_v35, %v109_v34  ;;  %v93_v42 = vld [vmem:[%s1304_s1 + $0x200] sm:$0xff] }
  0x19   :  { %698 = vmatpush3.bf16.msra.mxu0 %v697_v12  ;;  %v737_v40 = vpack.c.bf16 %v76_v33, %v75_v31  ;;  %v94_v43 = vld [vmem:[%s1304_s1 + $0x208] sm:$0xff]  ;;  %v125_v44 = vld [vmem:[%s1304_s1 + $0x300] sm:$0xff]  ;;  %v771_v45 = vpack.c.bf16 %v142_v38, %v141_v36  ;;  %v111_v47 = vld [vmem:[%s1304_s1 + $0x290] sm:$0xff] }
  0x1a   :  { %700 = vmatprep.subr.bf16.mxu0 %v699_v15  ;;  %v126_v46 = vld [vmem:[%s1304_s1 + $0x308] sm:$0xff]  ;;  %v112_v48 = vld [vmem:[%s1304_s1 + $0x298] sm:$0xff]  ;;  %v143_v49 = vld [vmem:[%s1304_s1 + $0x390] sm:$0xff]  ;;  %v741_v52 = vpack.c.bf16 %v94_v43, %v93_v42 }
  0x1b   :  { %730 = vmatpush3.bf16.msra.mxu1 %v729_v14  ;;  %v144_v50 = vld [vmem:[%s1304_s1 + $0x398] sm:$0xff]  ;;  %v21_v51 = vld [vmem:[%s1303_s0] sm:$0xff]  ;;  %v23_v53 = vld [vmem:[%s1303_s0 + $0x10] sm:$0xff]  ;;  %v773_v54 = vpack.c.bf16 %v126_v46, %v125_v44  ;;  %v743_v55 = vpack.c.bf16 %v112_v48, %v111_v47 }
  0x1c   :  { %732 = vmatprep.subr.bf16.mxu1 %v731_v19  ;;  %v95_v56 = vld [vmem:[%s1304_s1 + $0x210] sm:$0xff]  ;;  %v96_v57 = vld [vmem:[%s1304_s1 + $0x218] sm:$0xff]  ;;  %v775_v59 = vpack.c.bf16 %v144_v50, %v143_v49  ;;  %v113_v61 = vld [vmem:[%s1304_s1 + $0x2a0] sm:$0xff] }
  0x1d   :  { %702 = vmatpush3.bf16.msra.mxu0 %v701_v26  ;;  %v127_v58 = vld [vmem:[%s1304_s1 + $0x310] sm:$0xff]  ;;  %v128_v60 = vld [vmem:[%s1304_s1 + $0x318] sm:$0xff]  ;;  %v114_v62 = vld [vmem:[%s1304_s1 + $0x2a8] sm:$0xff]  ;;  %v745_v1 = vpack.c.bf16 %v96_v57, %v95_v56 }
  0x1e   :  { %704 = vmatprep.subr.bf16.mxu0 %v703_v28  ;;  %v145_v63 = vld [vmem:[%s1304_s1 + $0x3a0] sm:$0xff]  ;;  %v146_v0 = vld [vmem:[%s1304_s1 + $0x3a8] sm:$0xff]  ;;  %v777_v2 = vpack.c.bf16 %v128_v60, %v127_v58  ;;  %v747_v3 = vpack.c.bf16 %v114_v62, %v113_v61  ;;  %v115_v9 = vld [vmem:[%s1304_s1 + $0x2b0] sm:$0xff] }
  0x1f   :  { %734 = vmatpush3.bf16.msra.mxu1 %v733_v27  ;;  %v97_v4 = vld [vmem:[%s1304_s1 + $0x220] sm:$0xff]  ;;  %v98_v5 = vld [vmem:[%s1304_s1 + $0x228] sm:$0xff]  ;;  %v779_v7 = vpack.c.bf16 %v146_v0, %v145_v63  ;;  %v116_v10 = vld [vmem:[%s1304_s1 + $0x2b8] sm:$0xff] }
  0x20   :  { %736 = vmatprep.subr.bf16.mxu1 %v735_v32  ;;  %v129_v6 = vld [vmem:[%s1304_s1 + $0x320] sm:$0xff]  ;;  %v130_v8 = vld [vmem:[%s1304_s1 + $0x328] sm:$0xff]  ;;  %v147_v11 = vld [vmem:[%s1304_s1 + $0x3b0] sm:$0xff]  ;;  %v749_v13 = vpack.c.bf16 %v98_v5, %v97_v4  ;;  %v751_v15 = vpack.c.bf16 %v116_v10, %v115_v9 }
  0x21   :  { %706 = vmatpush3.bf16.msra.mxu0 %v705_v39  ;;  %v148_v12 = vld [vmem:[%s1304_s1 + $0x3b8] sm:$0xff]  ;;  %v781_v14 = vpack.c.bf16 %v130_v8, %v129_v6  ;;  %v99_v16 = vld [vmem:[%s1304_s1 + $0x230] sm:$0xff]  ;;  %v117_v21 = vld [vmem:[%s1304_s1 + $0x2c0] sm:$0xff] }
  0x22   :  { %740 = vmatprep.subr.bf16.mxu0 %v739_v41  ;;  %v100_v17 = vld [vmem:[%s1304_s1 + $0x238] sm:$0xff]  ;;  %v131_v18 = vld [vmem:[%s1304_s1 + $0x330] sm:$0xff]  ;;  %v783_v19 = vpack.c.bf16 %v148_v12, %v147_v11  ;;  %v118_v22 = vld [vmem:[%s1304_s1 + $0x2c8] sm:$0xff] }
  0x23   :  { %738 = vmatpush3.bf16.msra.mxu1 %v737_v40  ;;  %v132_v20 = vld [vmem:[%s1304_s1 + $0x338] sm:$0xff]  ;;  %v149_v23 = vld [vmem:[%s1304_s1 + $0x3c0] sm:$0xff]  ;;  %v150_v24 = vld [vmem:[%s1304_s1 + $0x3c8] sm:$0xff]  ;;  %v753_v25 = vpack.c.bf16 %v100_v17, %v99_v16  ;;  %v755_v30 = vpack.c.bf16 %v118_v22, %v117_v21 }
  0x24   :  { %772 = vmatprep.subr.bf16.mxu1 %v771_v45  ;;  %229 = vmatmul.mubr.f32.vlgmr.msra.gmra.mrb[0].mxu0 %v21_v51  ;;  %v101_v26 = vld [vmem:[%s1304_s1 + $0x240] sm:$0xff]  ;;  %v102_v27 = vld [vmem:[%s1304_s1 + $0x248] sm:$0xff]  ;;  %v785_v29 = vpack.c.bf16 %v132_v20, %v131_v18  ;;  %v28_v32 = vld [vmem:[%s1303_s0 + $0x38] sm:$0xff] }
  0x25   :  { %742 = vmatpush3.bf16.msra.mxu0 %v741_v52  ;;  %v26_v28 = vld [vmem:[%s1303_s0 + $0x28] sm:$0xff]  ;;  %v133_v31 = vld [vmem:[%s1304_s1 + $0x340] sm:$0xff] }
  0x26   :  { %299 = vmatmul.mubr.f32.vlgmr.msra.gmra.mrb[0].mxu1 %v23_v53  ;;  %744 = vmatprep.subr.bf16.mxu0 %v743_v55 }
  0x27   :  { %774 = vmatpush3.bf16.msra.mxu1 %v773_v54 }
  0x28   :  { %776 = vmatprep.subr.bf16.mxu1 %v775_v59 }
  0x29   :  { %746 = vmatpush3.bf16.msra.mxu0 %v745_v1 }
  0x2a   :  { %748 = vmatprep.subr.bf16.mxu0 %v747_v3 }
  0x2b   :  { %778 = vmatpush3.bf16.msra.mxu1 %v777_v2 }
  0x2c   :  { %780 = vmatprep.subr.bf16.mxu1 %v779_v7 }
  0x2d   :  { %750 = vmatpush3.bf16.msra.mxu0 %v749_v13 }
  0x2e   :  { %752 = vmatprep.subr.bf16.mxu0 %v751_v15 }
  0x2f   :  { %782 = vmatpush3.bf16.msra.mxu1 %v781_v14 }
  0x30   :  { %10 = vsyncpa [#allocation3], 0  ;;  %784 = vmatprep.subr.bf16.mxu1 %v783_v19  ;;  %v787_v33 = vpack.c.bf16 %v150_v24, %v149_v23  ;;  %v134_v34 = vld [vmem:[%s1304_s1 + $0x348] sm:$0xff]  ;;  %v119_v35 = vld [vmem:[%s1304_s1 + $0x2d0] sm:$0xff]  ;;  %368 = vmatprep.mubr.f32.mxu0 %v26_v28  ;;  %v757_v40 = vpack.c.bf16 %v102_v27, %v101_v26  ;;  %v458_v12 = vlaneseq  ;;  %vm503_vm5 = vcmask 7168  }
  0x31   :  { %v120_v36 = vld [vmem:[%s1304_s1 + $0x2d8] sm:$0xff]  ;;  %v151_v38 = vld [vmem:[%s1304_s1 + $0x3d0] sm:$0xff]  ;;  %438 = vmatprep.mubr.f32.mxu1 %v28_v32  ;;  %754 = vmatpush3.bf16.msra.mxu0 %v753_v25  ;;  %v789_v41 = vpack.c.bf16 %v134_v34, %v133_v31  ;;  %v121_v48 = vld [vmem:[%s1304_s1 + $0x2e0] sm:$0xff] }
  0x32   :  { %v152_v39 = vld [vmem:[%s1304_s1 + $0x3d8] sm:$0xff]  ;;  %756 = vmatprep.subr.bf16.mxu0 %v755_v30  ;;  %v759_v42 = vpack.c.bf16 %v120_v36, %v119_v35  ;;  %v103_v43 = vld [vmem:[%s1304_s1 + $0x250] sm:$0xff]  ;;  %v122_v49 = vld [vmem:[%s1304_s1 + $0x2e8] sm:$0xff]  ;;  %v1274_v13 = vand.u32 127, %v458_v12 }
  0x33   :  { %786 = vmatpush3.bf16.msra.mxu1 %v785_v29  ;;  %v104_v44 = vld [vmem:[%s1304_s1 + $0x258] sm:$0xff]  ;;  %v135_v45 = vld [vmem:[%s1304_s1 + $0x350] sm:$0xff]  ;;  %v791_v46 = vpack.c.bf16 %v152_v39, %v151_v38  ;;  %v153_v50 = vld [vmem:[%s1304_s1 + $0x3e0] sm:$0xff]  ;;  %v763_v54 = vpack.c.bf16 %v122_v49, %v121_v48 }
  0x34   :  { %788 = vmatprep.subr.bf16.mxu1 %v787_v33  ;;  %v136_v47 = vld [vmem:[%s1304_s1 + $0x358] sm:$0xff]  ;;  %v154_v51 = vld [vmem:[%s1304_s1 + $0x3e8] sm:$0xff]  ;;  %v761_v52 = vpack.c.bf16 %v104_v44, %v103_v43  ;;  %v105_v55 = vld [vmem:[%s1304_s1 + $0x260] sm:$0xff] }
  0x35   :  { %758 = vmatpush3.bf16.msra.mxu0 %v757_v40  ;;  %v793_v53 = vpack.c.bf16 %v136_v47, %v135_v45  ;;  %v106_v56 = vld [vmem:[%s1304_s1 + $0x268] sm:$0xff]  ;;  %v137_v57 = vld [vmem:[%s1304_s1 + $0x360] sm:$0xff]  ;;  %v795_v58 = vpack.c.bf16 %v154_v51, %v153_v50  ;;  %v123_v60 = vld [vmem:[%s1304_s1 + $0x2f0] sm:$0xff] }
  0x36   :  { %760 = vmatprep.subr.bf16.mxu0 %v759_v42  ;;  %v138_v59 = vld [vmem:[%s1304_s1 + $0x368] sm:$0xff]  ;;  %v124_v61 = vld [vmem:[%s1304_s1 + $0x2f8] sm:$0xff]  ;;  %v155_v62 = vld [vmem:[%s1304_s1 + $0x3f0] sm:$0xff]  ;;  %v765_v0 = vpack.c.bf16 %v106_v56, %v105_v55 }
  0x37   :  { %790 = vmatpush3.bf16.msra.mxu1 %v789_v41  ;;  %v156_v63 = vld [vmem:[%s1304_s1 + $0x3f8] sm:$0xff]  ;;  %v797_v1 = vpack.c.bf16 %v138_v59, %v137_v57  ;;  %v767_v2 = vpack.c.bf16 %v124_v61, %v123_v60  ;;  %v107_v3 = vld [vmem:[%s1304_s1 + $0x270] sm:$0xff]  ;;  %v25_v10 = vld [vmem:[%s1303_s0 + $0x20] sm:$0xff] }
  0x38   :  { %792 = vmatprep.subr.bf16.mxu1 %v791_v46  ;;  %v108_v4 = vld [vmem:[%s1304_s1 + $0x278] sm:$0xff]  ;;  %v799_v5 = vpack.c.bf16 %v156_v63, %v155_v62  ;;  %v139_v6 = vld [vmem:[%s1304_s1 + $0x370] sm:$0xff]  ;;  %v532_v24 = vld [vmem:[%s1305_s2] ss:$0 sm:$0xff] }
  0x39   :  { %762 = vmatpush3.bf16.msra.mxu0 %v761_v52  ;;  %v140_v7 = vld [vmem:[%s1304_s1 + $0x378] sm:$0xff]  ;;  %v769_v8 = vpack.c.bf16 %v108_v4, %v107_v3  ;;  %v27_v11 = vld [vmem:[%s1303_s0 + $0x30] sm:$0xff]  ;;  %v445_v4 = vld [vmem:[%s1307_s4] sm:$0xff]  ;;  %s815_s4 = scalar_lea.hbm %s1308_s5, 16 }
  0x3a   :  { %764 = vmatprep.subr.bf16.mxu0 %v763_v54  ;;  %v801_v9 = vpack.c.bf16 %v140_v7, %v139_v6  ;;  %p816_p0 = scmp.ne.s32.totalorder %s1308_s5, %s815_s4  ;;  %p819_p1 = scmp.lt.u32.totalorder %s815_s4, %s1308_s5 }
  0x3b   :  { %794 = vmatpush3.bf16.msra.mxu1 %v793_v53 }
  0x3c   :  { %796 = vmatprep.subr.bf16.mxu1 %v795_v58  ;;  %v827_v58 = vmov 0.0   ;;  %p821_p2 = pnand %p819_p1, %p816_p0 }
  0x3d   :  { %766 = vmatpush3.bf16.msra.mxu0 %v765_v0 }
  0x3e   :  { %768 = vmatprep.subr.bf16.mxu0 %v767_v2 }
  0x3f   :  { %798 = vmatpush3.bf16.msra.mxu1 %v797_v1 }
  0x40   :  { %800 = vmatprep.subr.bf16.mxu1 %v799_v5 }
  0x41   :  { %770 = vmatpush3.bf16.msra.mxu0 %v769_v8 }
  0x43   :  { %802 = vmatpush3.bf16.msra.mxu1 %v801_v9 }
  0x44   :  { %369 = vmatmul.mubr.f32.vlgmr.msra.gmra.mrb[2].mxu0 %v25_v10 }
  0x46   :  { %439 = vmatmul.mubr.f32.vlgmr.msra.gmra.mrb[2].mxu1 %v27_v11 }
  0x99   :  { %v449_v14 = vpop.xlane.xlu0 %448 }
  0x9a   :  { %v450_v15 = vsub.f32 %v940_v37, %v449_v14  ;;  %vm460_vm1 = vcmp.ge.f32.partialorder %v940_v37, %v449_v14 }
  0x9b   :  { %v461_v16 = vsel %vm460_vm1, %v1274_v13, 16 }
  0x9c   :  { %v451_v17 = vmul.f32 1.442695, %v450_v15  ;;  %v462_v18 = vsel %vm446_vm0, %v461_v16, 2147483647 }
  0x9d   :  { %v464_v19 = vshra.s32 %v462_v18, 16  ;;  %v463_v41 = vand.u32 65535, %v462_v18 }
  0x9e   :  { %807 = vpow2.f32 %v451_v17 }
  0x9f   :  { %v466_v20 = vcvt.s32.f32 %v464_v19  ;;  %v465_v42 = vcvt.s32.f32 %v463_v41 }
  0xa1   :  { %467 = vmin.xlane.f32.xlu1 %v466_v20 }
  0xa8   :  { %v808_v21 = vpop.eup %807 }
  0xa9   :  { %v453_v22 = vsel %vm446_vm0, %v808_v21, 0.0 }
  0xaa   :  { %454 = vadd.xlane.f32.xlu1 %v453_v22 }
  0xf7   :  { %v567_v23 = vpop.f32.mrb[0].mxu0 }
  0xf8   :  { %v568_v25 = vpop.f32.mrb[1].mxu0 }
  0xf9   :  { %v602_v37 = vpop.f32.mrb[0].mxu1  ;;  %v569_v26 = vadd.f32 %v568_v25, %v567_v23 }
  0xfa   :  { %v603_v27 = vpop.f32.mrb[1].mxu1 }
  0xfb   :  { %v604_v28 = vadd.f32 %v603_v27, %v602_v37  ;;  %v231_v29 = vadd.f32 %v569_v26, %v532_v24 }
  0xfd   :  { %v301_v30 = vadd.f32 %v604_v28, %v231_v29 }
 0x117   :  { %v637_v31 = vpop.f32.mrb[2].mxu0 }
 0x118   :  { %v638_v32 = vpop.f32.mrb[3].mxu0 }
 0x119   :  { %v672_v33 = vpop.f32.mrb[2].mxu1  ;;  %v639_v34 = vadd.f32 %v638_v32, %v637_v31 }
 0x11a   :  { %v673_v35 = vpop.f32.mrb[3].mxu1 }
 0x11b   :  { %v674_v36 = vadd.f32 %v673_v35, %v672_v33  ;;  %v371_v38 = vadd.f32 %v639_v34, %v301_v30 }
 0x11d   :  { %v441_v39 = vadd.f32 %v674_v36, %v371_v38 }
 0x11f   :  { %v485_v40 = vsel %vm446_vm0, %v441_v39, -inf }
 0x120   :  { %486 = vmax.xlane.f32.xlu0 %v485_v40 }
 0x12e   :  { %v468_v43 = vpop.xlane.xlu1 %467 }
 0x12f   :  { %vm469_vm2 = vcmp.eq.f32.partialorder %v466_v20, %v468_v43  ;;  %v474_v51 = vcvt.f32.s32 %v468_v43 }
 0x130   :  { %v470_v44 = vsel %vm469_vm2, %v465_v42, inf }
 0x131   :  { %471 = vmin.xlane.f32.xlu1 %v470_v44  ;;  %v475_v53 = vshll.u32 %v474_v51, 16 }
 0x137   :  { %v455_v50 = vpop.xlane.xlu1 %454 }
 0x1ad   :  { %v487_v45 = vpop.xlane.xlu0 %486 }
 0x1ae   :  { %v488_v46 = vsub.f32 %v441_v39, %v487_v45 }
 0x1b0   :  { %v489_v47 = vmul.f32 1.442695, %v488_v46 }
 0x1b2   :  { %809 = vpow2.f32 %v489_v47 }
 0x1b3   :  { %811 = vrcp.f32 %v455_v50 }
 0x1bc   :  { %v810_v48 = vpop.eup %809 }
 0x1bd   :  { %v491_v49 = vsel %vm446_vm0, %v810_v48, 0.0  ;;  %v812_v56 = vpop.eup %811 }
 0x1be   :  { %492 = vadd.xlane.f32.xlu0 %v491_v49  ;;  %v472_v52 = vpop.xlane.xlu1 %471  ;;  %vm480_vm3 = vcmp.gt.f32.partialorder %v812_v56, 0.2 }
 0x1bf   :  { %v473_v54 = vcvt.f32.s32 %v472_v52  ;;  %v534_v59 = vsel %vm480_vm3, 1.0, %v827_v58 }
 0x1c0   :  { %v483_v60 = vmul.f32 16.0, %v534_v59 }
 0x1c1   :  { %v476_v57 = vadd.s32 %v475_v53, %v473_v54 }
 0x1c3   :  { %vm477_vm4 = vcmp.eq.s32.totalorder %v1274_v13, %v476_v57 }
 0x1c4   :  { %v533_v62 = vsel %vm477_vm4, 1.0, %v827_v58 }
 0x1c5   :  { %v484_v0 = vmul.f32 %v533_v62, %v483_v60 }
 0x24b   :  { %v493_v55 = vpop.xlane.xlu0 %492 }
 0x24c   :  { %813 = vlog2.f32 %v493_v55 }
 0x256   :  { %v814_v61 = vpop.eup %813 }
 0x257   :  { %v495_v63 = vmul.f32 0.6931472, %v814_v61 }
 0x259   :  { %v496_v1 = vsub.f32 %v488_v46, %v495_v63 }
 0x25b   :  { %v497_v2 = vmul.f32 %v496_v1, %v484_v0 }
 0x25d   :  { %v498_v3 = vsel %vm446_vm0, %v497_v2, 0.0 }
 0x25e   :  { %499 = vadd.xlane.f32.xlu0 %v498_v3 }
 0x2eb   :  { %v500_v5 = vpop.xlane.xlu0 %499 }
 0x2ec   :  { %v501_v6 = vsub.f32 0.0, %v500_v5 }
 0x2ee   :  { %v502_v7 = vmul.f32 %v501_v6, %v445_v4 }
 0x2f0   :  { %v504_v8 = vsel %vm503_vm5, %v502_v7, 0.0 }
 0x2f1   :  { %505 = vadd.xlane.f32.xlu1 %v504_v8 }
 0x37e   :  { %v506_v9 = vpop.xlane.xlu1 %505 }
 0x37f   :  { %v507_v10 = vrot.slane %v506_v9, 4 }
 0x381   :  { %v508_v11 = vadd.f32 %v507_v10, %v506_v9 }
 0x383   :  { %v509_v12 = vrot.slane %v508_v11, 2 }
 0x385   :  { %v510_v13 = vadd.f32 %v509_v12, %v508_v11 }
 0x387   :  { %v511_v14 = vrot.slane %v510_v13, 1 }
 0x389   :  { %v512_v15 = vadd.f32 %v511_v14, %v510_v13 }
 0x38b   :  { %803 = vpush %v512_v15 }
 0x3bc   :  { %s804_s9 = spop %803 }
 0x3bd   :  { %s516_s10 = smul.f32 0.125, %s804_s9 }
 0x3bf   :  { %518 = sst [smem:[#allocation2]] %s516_s10 }
 0x3c0   :  { %824 = shalt.err (!%p821_p2)
}
 0x3c1   :  { %s828_s17 = smov [#allocation2]  }
 0x3c2   :  { %526 = dma.smem_to_hbm %s828_s17, 16, %s1308_s5, [#allocation3]  }
 0x3c3   :  { %825 = dma.done.wait [#allocation3], 16  }
 0x3c4   :  { %826 = vsyncadd [#allocation3], 4294967280 }
 0x3c5   :  { %530 = sfence }
 0x3c6   :  { %531 = vsyncpa [#allocation3], 1 }

</bundles_post_ra>
